<compile_context>
chip_gen: v7x
topology: tpu7x:2x2x1
jax: 0.10.0
libtpu: 0.0.40
codegen_flags: <defaults>
</compile_context>

<pallas_src>
import math

import jax
import jax.numpy as jnp
from jax.experimental import pallas as pl
from jax.experimental.pallas import tpu as pltpu


def residual_layer_kernel(x_ref, w1_ref, b1_ref, w2_ref, b2_ref, o_ref):
    """One (tb, W) row tile of: relu(fc2(relu(fc1(x))) + x)."""
    x = x_ref[...]                                            # (tb, W), input dtype
    # fc1 on the MXU: compute-dtype (bf16) operands, f32 accumulation.
    h = jnp.dot(x.astype(w1_ref.dtype), w1_ref[...],
                preferred_element_type=jnp.float32)
    h = jnp.maximum(h + b1_ref[...], 0.0)                     # bias + ReLU in f32
    # fc2
    y = jnp.dot(h.astype(w2_ref.dtype), w2_ref[...],
                preferred_element_type=jnp.float32)
    y = y + b2_ref[...] + x.astype(jnp.float32)               # bias + residual in f32
    o_ref[...] = jnp.maximum(y, 0.0).astype(o_ref.dtype)      # final ReLU


def _round_up(n, m):
    return ((n + m - 1) // m) * m


def residual_layer(x, w1, b1, w2, b2, *, tb=256, compute_dtype=jnp.bfloat16):
    """x: (B, W). w1, w2: (W, W) stored as (in, out). b1, b2: (1, W).

    Matmuls run on the MXU in `compute_dtype` with f32 accumulation; bias,
    residual and ReLU math is f32. Returns (B, W) in x.dtype.
    """
    B, W = x.shape

    # Lane-dense feature axis: pad W up to a multiple of 128.
    Wp = _round_up(W, 128)
    pad = Wp - W
    if pad:
        x_p = jnp.pad(x, ((0, 0), (0, pad)))
        w1_p = jnp.pad(w1, ((0, pad), (0, pad)))
        w2_p = jnp.pad(w2, ((0, pad), (0, pad)))
        b1_p = jnp.pad(b1, ((0, 0), (0, pad)))
        b2_p = jnp.pad(b2, ((0, 0), (0, pad)))
    else:
        x_p, w1_p, w2_p, b1_p, b2_p = x, w1, w2, b1, b2

    # Weights feed the MXU in compute_dtype (bf16 fast path); biases stay f32.
    w1_p = w1_p.astype(compute_dtype)
    w2_p = w2_p.astype(compute_dtype)
    b1_p = b1_p.astype(jnp.float32)
    b2_p = b2_p.astype(jnp.float32)

    # Row tile: multi-step grid -> software pipelining + megacore sharding.
    tb = min(tb, B)
    if tb < B:
        tb = max(8, (tb // 8) * 8)     # keep tiles sublane-aligned (f32: 8 rows)
    grid = (pl.cdiv(B, tb),)

    # Explicit scoped-VMEM budget for the actual resident footprint
    # (inputs/outputs double-buffered by the Pallas pipeline).
    w_itemsize = jnp.dtype(compute_dtype).itemsize
    x_itemsize = x.dtype.itemsize
    resident_bytes = (
        2 * 2 * Wp * Wp * w_itemsize     # w1 + w2 (double-buffered)
        + 2 * 2 * Wp * 4                 # biases (f32, double-buffered)
        + 2 * 2 * tb * Wp * x_itemsize   # x + out tiles (double-buffered)
        + 4 * tb * Wp * 4                # f32 intermediates / headroom
    )
    vmem_limit = int(min(max(2 * resident_bytes, 32 << 20), 60 << 20))

    cost = pl.CostEstimate(
        flops=4 * B * Wp * Wp,           # two (B,Wp)x(Wp,Wp) matmuls
        transcendentals=0,
        bytes_accessed=int(2 * B * Wp * x_itemsize
                           + 2 * Wp * Wp * w_itemsize
                           + 2 * Wp * 4),
    )

    # Invariant operands: constant index_map -> Pallas re-uses the resident
    # block across grid steps (no re-DMA).
    weight_spec = lambda: pl.BlockSpec((Wp, Wp), lambda i: (0, 0))
    bias_spec = lambda: pl.BlockSpec((1, Wp), lambda i: (0, 0))

    out = pl.pallas_call(
        residual_layer_kernel,
        out_shape=jax.ShapeDtypeStruct((B, Wp), x.dtype),
        grid_spec=pltpu.PrefetchScalarGridSpec(
            num_scalar_prefetch=0,
            grid=grid,
            in_specs=[
                pl.BlockSpec((tb, Wp), lambda i: (i, 0)),   # x row tile (pipelined)
                weight_spec(),                              # w1
                bias_spec(),                                # b1
                weight_spec(),                              # w2
                bias_spec(),                                # b2
            ],
            out_specs=pl.BlockSpec((tb, Wp), lambda i: (i, 0)),
        ),
        compiler_params=pltpu.CompilerParams(
            dimension_semantics=("parallel",),
            vmem_limit_bytes=vmem_limit,
        ),
        cost_estimate=cost,
    )(x_p, w1_p, b1_p, w2_p, b2_p)

    return out[:, :W] if pad else out


def init_linear_params(key, width):
    """Deterministic init mimicking nn.Linear's default (uniform +/- 1/sqrt(fan_in)).

    Returns W transposed to (in, out) so the kernel computes x @ W + b.
    """
    k_w, k_b = jax.random.split(key)
    bound = 1.0 / math.sqrt(width)
    w = jax.random.uniform(k_w, (width, width), jnp.float32, -bound, bound)
    b = jax.random.uniform(k_b, (1, width), jnp.float32, -bound, bound)
    return w, b


def residual_layer_ref(x, w1, b1, w2, b2, compute_dtype=jnp.bfloat16):
    """Pure-JAX reference using the same matmul dtype / f32 accumulation."""
    h = jnp.dot(x.astype(compute_dtype), w1.astype(compute_dtype),
                preferred_element_type=jnp.float32)
    h = jnp.maximum(h + b1, 0.0)
    y = jnp.dot(h.astype(compute_dtype), w2.astype(compute_dtype),
                preferred_element_type=jnp.float32)
    y = y + b2 + x.astype(jnp.float32)
    return jnp.maximum(y, 0.0).astype(x.dtype)


if __name__ == "__main__":
    batch, width = 40, 32        # width is zero-padded to 128 lanes inside the wrapper
    key = jax.random.PRNGKey(0)
    k_x, k_fc1, k_fc2 = jax.random.split(key, 3)

    x = jax.random.normal(k_x, (batch, width), jnp.float32)
    w1, b1 = init_linear_params(k_fc1, width)
    w2, b2 = init_linear_params(k_fc2, width)

    # tb=16 gives a 3-step "parallel" grid for this small demo (exercises the
    # pipelined / megacore path and the partial last row block: 40 = 2*16 + 8).
    out = residual_layer(x, w1, b1, w2, b2, tb=16)
    out = jax.block_until_ready(out)

    ref = residual_layer_ref(x, w1, b1, w2, b2)
    assert out.shape == (batch, width)
    assert jnp.allclose(out, ref, atol=2e-3, rtol=2e-3), "mismatch vs JAX reference"

    print("KERNEL_OK")
</pallas_src>

<mosaic_0001>
module attributes {stable_mosaic.version = 11 : i64} {
  func.func @residual_layer_kernel(%arg0: i32, %arg1: memref<16x128xf32, #tpu.memory_space<vmem>>, %arg2: memref<128x128xbf16, #tpu.memory_space<vmem>>, %arg3: memref<1x128xf32, #tpu.memory_space<vmem>>, %arg4: memref<128x128xbf16, #tpu.memory_space<vmem>>, %arg5: memref<1x128xf32, #tpu.memory_space<vmem>>, %arg6: memref<16x128xf32, #tpu.memory_space<vmem>>) attributes {dimension_semantics = [#tpu.dimension_semantics<parallel>], iteration_bounds = array<i64: 3>, scalar_prefetch = 0 : i64, scratch_operands = 0 : i64, tpu.core_type = #tpu.core_type<tc>, window_params = [{transform_indices = @transform_0, window_bounds = array<i64: 16, 128>}, {pipeline_mode = #tpu.pipeline_mode<synchronous>, transform_indices = @transform_1, window_bounds = array<i64: 128, 128>}, {pipeline_mode = #tpu.pipeline_mode<synchronous>, transform_indices = @transform_2, window_bounds = array<i64: 1, 128>}, {pipeline_mode = #tpu.pipeline_mode<synchronous>, transform_indices = @transform_3, window_bounds = array<i64: 128, 128>}, {pipeline_mode = #tpu.pipeline_mode<synchronous>, transform_indices = @transform_4, window_bounds = array<i64: 1, 128>}, {transform_indices = @transform_5, window_bounds = array<i64: 16, 128>}]} {
    %c0 = arith.constant 0 : index
    %c0_0 = arith.constant 0 : index
    %0 = vector.load %arg1[%c0, %c0_0] : memref<16x128xf32, #tpu.memory_space<vmem>>, vector<16x128xf32>
    %1 = arith.truncf %0 : vector<16x128xf32> to vector<16x128xbf16>
    %c0_1 = arith.constant 0 : index
    %c0_2 = arith.constant 0 : index
    %2 = vector.load %arg2[%c0_1, %c0_2] : memref<128x128xbf16, #tpu.memory_space<vmem>>, vector<128x128xbf16>
    %cst = arith.constant dense<0.000000e+00> : vector<16x128xf32>
    %3 = tpu.matmul %1, %2, %cst {dimension_numbers = #tpu.dot_dimension_numbers<[1], [0], [0], [1], [0, 0, 1, 1], [], []>} : vector<16x128xbf16>, vector<128x128xbf16>, vector<16x128xf32> -> vector<16x128xf32>
    %c0_3 = arith.constant 0 : index
    %c0_4 = arith.constant 0 : index
    %4 = vector.load %arg3[%c0_3, %c0_4] : memref<1x128xf32, #tpu.memory_space<vmem>>, vector<1x128xf32>
    %5 = vector.broadcast %4 : vector<1x128xf32> to vector<16x128xf32>
    %6 = arith.addf %3, %5 : vector<16x128xf32>
    %cst_5 = arith.constant 0.000000e+00 : f32
    %7 = vector.broadcast %cst_5 : f32 to vector<16x128xf32>
    %8 = arith.maximumf %6, %7 : vector<16x128xf32>
    %9 = arith.truncf %8 : vector<16x128xf32> to vector<16x128xbf16>
    %c0_6 = arith.constant 0 : index
    %c0_7 = arith.constant 0 : index
    %10 = vector.load %arg4[%c0_6, %c0_7] : memref<128x128xbf16, #tpu.memory_space<vmem>>, vector<128x128xbf16>
    %cst_8 = arith.constant dense<0.000000e+00> : vector<16x128xf32>
    %11 = tpu.matmul %9, %10, %cst_8 {dimension_numbers = #tpu.dot_dimension_numbers<[1], [0], [0], [1], [0, 0, 1, 1], [], []>} : vector<16x128xbf16>, vector<128x128xbf16>, vector<16x128xf32> -> vector<16x128xf32>
    %c0_9 = arith.constant 0 : index
    %c0_10 = arith.constant 0 : index
    %12 = vector.load %arg5[%c0_9, %c0_10] : memref<1x128xf32, #tpu.memory_space<vmem>>, vector<1x128xf32>
    %13 = vector.broadcast %12 : vector<1x128xf32> to vector<16x128xf32>
    %14 = arith.addf %11, %13 : vector<16x128xf32>
    %15 = arith.addf %14, %0 : vector<16x128xf32>
    %cst_11 = arith.constant 0.000000e+00 : f32
    %16 = vector.broadcast %cst_11 : f32 to vector<16x128xf32>
    %17 = arith.maximumf %15, %16 : vector<16x128xf32>
    %c0_12 = arith.constant 0 : index
    %c0_13 = arith.constant 0 : index
    %18 = vector.load %arg6[%c0_12, %c0_13] : memref<16x128xf32, #tpu.memory_space<vmem>>, vector<16x128xf32>
    tpu.vector_store %arg6[%c0_12, %c0_13], %17 {strides = array<i32>} : memref<16x128xf32, #tpu.memory_space<vmem>>, vector<16x128xf32>,
    return
  }
  func.func @transform_0(%arg0: i32) -> (i32, i32) {
    %c0_i32 = arith.constant 0 : i32
    %c0_i32_0 = arith.constant 0 : i32
    return %arg0, %c0_i32 : i32, i32
  }
  func.func @transform_1(%arg0: i32) -> (i32, i32) {
    %c0_i32 = arith.constant 0 : i32
    %c0_i32_0 = arith.constant 0 : i32
    %c0_i32_1 = arith.constant 0 : i32
    return %c0_i32, %c0_i32_0 : i32, i32
  }
  func.func @transform_2(%arg0: i32) -> (i32, i32) {
    %c0_i32 = arith.constant 0 : i32
    %c0_i32_0 = arith.constant 0 : i32
    %c0_i32_1 = arith.constant 0 : i32
    return %c0_i32, %c0_i32_0 : i32, i32
  }
  func.func @transform_3(%arg0: i32) -> (i32, i32) {
    %c0_i32 = arith.constant 0 : i32
    %c0_i32_0 = arith.constant 0 : i32
    %c0_i32_1 = arith.constant 0 : i32
    return %c0_i32, %c0_i32_0 : i32, i32
  }
  func.func @transform_4(%arg0: i32) -> (i32, i32) {
    %c0_i32 = arith.constant 0 : i32
    %c0_i32_0 = arith.constant 0 : i32
    %c0_i32_1 = arith.constant 0 : i32
    return %c0_i32, %c0_i32_0 : i32, i32
  }
  func.func @transform_5(%arg0: i32) -> (i32, i32) {
    %c0_i32 = arith.constant 0 : i32
    %c0_i32_0 = arith.constant 0 : i32
    return %arg0, %c0_i32 : i32, i32
  }
}

</mosaic_0001>

<bundles_post_ra>
// kernel: tpu_custom_call.1
= control target key start
LH: loop header
LB: loop body
LE: loop exit
PB: predicated region body
PF: predicated region fallthrough
CT: control target
= control target key end

     0   :  { %10 = vsyncpa [#allocation3], 0  ;;  %s1279_s0 = inlined_call_operand.hbm [shape: f32[40,128], index: 0, kind: input, shape index: {}]   ;;  %s1280_s1 = inlined_call_operand.hbm [shape: bf16[128,128], index: 1, kind: input, shape index: {}]   ;;  %s1281_s2 = inlined_call_operand.vmem [shape: f32[1,128], index: 2, kind: input, shape index: {}]   ;;  %s1282_s3 = inlined_call_operand.hbm [shape: bf16[128,128], index: 3, kind: input, shape index: {}]   ;;  %s1283_s4 = inlined_call_operand.vmem [shape: f32[1,128], index: 4, kind: input, shape index: {}]   ;;  %s1284_s5 = inlined_call_operand.hbm [shape: f32[40,128], index: 5, kind: output, shape index: {}]  }
   0x1   :  { %12 = vsyncpa [#allocation3 + $0x1], 0 }
   0x2   :  { %13 = vsyncpa [#allocation6], 0 }
   0x3   :  { %14 = vsyncpa [#allocation4], 0 }
   0x4   :  { %16 = vsyncpa [#allocation4 + $0x1], 0  ;;  %s1023_s18 = smov 0   ;;  %s1025_s19 = smov 0  }
   0x5   :  { %s1027_s20 = smov 0   ;;  %s1029_s21 = smov 0  }
   0x6 LB: > { %s1044_s22 = sadd.s32 4294967295, %s979_s21   ;;  %s637_s23 = sadd.s32 4294967294, %s979_s21   ;;  %s979_s21 = sphi %s1029_s21, %s1306_s21   ;;  %s975_s20 = sphi %s1027_s20, %s1305_s20   ;;  %s971_s19 = sphi %s1025_s19, %s1304_s19   ;;  %s967_s18 = sphi %s1023_s18, %s1303_s18  }
   0x7   : > { %s1048_s24 = sadd.s32 1, %s979_s21   ;;  %s29_s25 = sadd.s32 1, %s975_s20 }
   0x8   : > { %s26_s26 = ssub.s32 %s979_s21, %s1048_s24  ;;  %p36_p0 = scmp.ne.s32.totalorder %s975_s20, %s971_s19 }
   0x9   : > { %p27_p1 = scmp.eq.s32.totalorder %s26_s26, 0  ;;  %p37_p2 = scmp.eq.s32.totalorder %s979_s21, 0 }
   0xa   : > { %p42_p3 = scmp.ne.s32.totalorder %s971_s19, %s967_s18  ;;  %p1285_p4 = scmp.eq.s32.totalorder %s1044_s22, 0 }
   0xb   : > { %s1060_s27 = scalar_select %p27_p1, %s975_s20, %s29_s25  }
   0xc   : > { %p1062_p5 = por %p37_p2, %p36_p0  ;;  %p1068_p6 = por %p1285_p4, %p42_p3 }
   0xd   : > { %1288 = sst [smem:[#allocation12_spill]] %s1060_s27  ;;  %p150_p7 = scmp.eq.s32.totalorder %s1044_s22, 2 }
   0xe   : > { %s1289_s28 = scalar_select %p1062_p5, 1, 0 }
   0xf   : > { %s1290_s29 = scalar_select %p1068_p6, 1, 0 }
  0x10   : > { %p156_p8 = scmp.eq.s32.totalorder %s637_s23, 2  ;;  %p638_p9 = scmp.ge.s32.totalorder %s979_s21, 1 }
  0x11   : > { %p163_p10 = scmp.lt.s32.totalorder %s979_s21, 4  ;;  %p1075_p11 = por %p150_p7, %p36_p0 }
  0x12   : > { %p1079_p12 = por %p156_p8, %p42_p3  ;;  %s981_s8 = smov [#allocation5]  }
  0x13   : > { %s1291_s30 = scalar_select %p1075_p11, 1, 0 }
  0x14   : > { %s1292_s6 = scalar_select %p1079_p12, 1, 0 }
  0x15   : > { %p1083_p13 = pnand %p638_p9, %p163_p10  ;;  %s175_s9 = sshll.u32 %s981_s8, 4  ;;  %s176_s9 = int_to_ptr.vmem [resolvable:$true] %s175_s9 }
  0x16   : > { %s982_s11 = smov [#allocation7]   ;;  %s825_s15 = scalar_lea.hbm %s1280_s1, 1024 }
  0x17   : > { %s1293_s7 = scalar_select %p1083_p13, 1, 0 }
  0x18   : > { %p751_p1 = pneg %p1083_p13  ;;  %s191_s12 = sshll.u32 %s982_s11, 4  ;;  %s1095_s12 = int_to_ptr.vmem [resolvable:$true] %s191_s12 }
  0x19   : > { %p826_p0 = scmp.ne.s32.totalorder %s1280_s1, %s825_s15  ;;  %p832_p9 = scmp.lt.u32.totalorder %s825_s15, %s1280_s1 }
  0x1a   : > { %p1091_p2 = pnand %p751_p1, %p1285_p4 }
  0x1c   : > { %p827_p3 = pneg %p1091_p2 }
  0x1e   : > { %p828_p7 = pnand %p827_p3, %p826_p0 }
  0x20   : > { %p829_p8 = pneg %p828_p7 }
  0x22   : > { %p834_p10 = pnand %p832_p9, %p829_p8 }
  0x24   : > { %837 = shalt.err (!%p834_p10)
}
  0x25   : > { %s838_s26 = scalar_lea.vmem %s176_s9, 1024  ;;  %p846_p11 = scmp.lt.s32.totalorder %s176_s9, %s176_s9 }
  0x26   : > { %p839_p1 = scmp.ne.s32.totalorder %s176_s9, %s838_s26  ;;  %p847_p6 = scmp.lt.s32.totalorder %s838_s26, %s838_s26 }
  0x28   : > { %p841_p4 = pnand %p839_p1, %p827_p3  ;;  %p848_p13 = por %p847_p6, %p846_p11 }
  0x2a   : > { %p842_p12 = pneg %p841_p4 }
  0x2c   : > { %p849_p5 = pnand %p848_p13, %p842_p12 }
  0x2e   : > { %852 = shalt.err (!%p849_p5)
}
  0x2f   : > { %s983_s8 = smov 64   ;;  %s984_s11 = smov 4  }
  0x30   : > { %754 = dma.hbm_to_vmem [thread:$0]  (!%p1091_p2), %s1280_s1, 1024, %s176_s9, [#allocation6], %s983_s8, %s983_s8, %s984_s11  }
  0x31   : > { %s853_s17 = scalar_lea.hbm %s1282_s3, 1024 }
  0x32   : > { %p854_p4 = scmp.ne.s32.totalorder %s1282_s3, %s853_s17  ;;  %p860_p11 = scmp.lt.u32.totalorder %s853_s17, %s1282_s3 }
  0x34   : > { %p856_p5 = pnand %p854_p4, %p827_p3 }
  0x36   : > { %p857_p6 = pneg %p856_p5 }
  0x38   : > { %p862_p12 = pnand %p860_p11, %p857_p6 }
  0x3a   : > { %865 = shalt.err (!%p862_p12)
}
  0x3b   : > { %s866_s9 = scalar_lea.vmem %s1095_s12, 1024  ;;  %p874_p8 = scmp.lt.s32.totalorder %s1095_s12, %s1095_s12 }
  0x3c   : > { %p867_p13 = scmp.ne.s32.totalorder %s1095_s12, %s866_s9  ;;  %p875_p9 = scmp.lt.s32.totalorder %s866_s9, %s866_s9 }
  0x3e   : > { %p869_p0 = pnand %p867_p13, %p827_p3  ;;  %p876_p10 = por %p875_p9, %p874_p8 }
  0x40   : > { %p870_p7 = pneg %p869_p0 }
  0x42   : > { %p877_p1 = pnand %p876_p10, %p870_p7 }
  0x44   : > { %880 = shalt.err (!%p877_p1)
}
  0x45   : > { %757 = dma.hbm_to_vmem [thread:$0]  (!%p1091_p2), %s1282_s3, 1024, %s1095_s12, [#allocation6], %s983_s8, %s983_s8, %s984_s11  }
  0x46   : > { %p641_p4 = scmp.ge.s32.totalorder %s979_s21, 3 }
  0x47   : > { %p1295_p5 = scmp.ne.s32.totalorder (!%p641_p4), %s1289_s28, 0 }
  0x48   : > { %204 = sbr.rel (%p641_p4) target bundleno = 114 (0x72), region = 32 }
  0x4f   : > { %207 = sbr.rel (!%p1295_p5) target bundleno = 114 (0x72), region = 36  ;;  %s208_s14 = sand.u32 (%p1295_p5), 1, %s975_s20  }
  0x50   : > { %s643_s15 = sshll.u32 (%p1295_p5), %s979_s21, 1  ;;  %s642_s16 = sshll.u32 (%p1295_p5), %s208_s14, 4 }
  0x51   : > { %s214_s17 = ssub.s32 (%p1295_p5), 5, %s643_s15  ;;  %s1152_s25 = scalar_lea.sflag (%p1295_p5), [#allocation3], %s208_s14 }
  0x52   : > { %p215_p3 = scmp.lt.s32.totalorder (%p1295_p5), %s214_s17, 2  ;;  %s212_s12 = scalar_lea.vmem (%p1295_p5), [#allocation2], %s642_s16 }
  0x56   : > { %s1308_s17 = smov (!%p215_p3, %s214_s17), 2 }
  0x57   : > { %s1149_s10 = sshll.u32 %s1308_s17, 7 }
  0x58   : > { %s219_s23 = ssub.s32 256, %s1149_s10 }
  0x59   : > { %220 = vsyncadd %s1152_s25, %s219_s23  ;;  %p645_p2 = scmp.ne.s32.totalorder %s1149_s10, 0  ;;  %s681_s28 = sshll.u32 %s979_s21, 8 }
  0x5a   : > { %s1160_s26 = scalar_lea.hbm %s1279_s0, %s681_s28  ;;  %s225_s9 = sshll.u32 %s212_s12, 4  ;;  %s1162_s9 = int_to_ptr.vmem [resolvable:$true] %s225_s9 }
  0x5b   : > { %s881_s27 = scalar_lea.hbm %s1160_s26, %s1149_s10  ;;  %s885_s15 = scalar_lea.hbm %s1279_s0, 640 }
  0x5c   : > { %p882_p6 = scmp.ne.s32.totalorder %s1160_s26, %s881_s27  ;;  %p886_p13 = scmp.lt.u32.totalorder %s1160_s26, %s1279_s0 }
  0x5d   : > { %p887_p0 = scmp.lt.u32.totalorder %s885_s15, %s881_s27  ;;  %p889_p8 = scmp.lt.u32.totalorder %s881_s27, %s1160_s26 }
  0x5e   : > { %p883_p11 = pnand %p882_p6, %p645_p2 }
  0x5f   : > { %p888_p7 = por %p887_p0, %p886_p13 }
  0x60   : > { %p884_p12 = pneg %p883_p11 }
  0x61   : > { %p890_p9 = por %p889_p8, %p888_p7 }
  0x63   : > { %p891_p10 = pnand %p890_p9, %p884_p12 }
  0x65   : > { %894 = shalt.err (!%p891_p10)
}
  0x66   : > { %s895_s23 = scalar_lea.vmem %s1162_s9, %s1149_s10  ;;  %s985_s12 = smov [#allocation2]  }
  0x67   : > { %p896_p1 = scmp.ne.s32.totalorder %s1162_s9, %s895_s23  ;;  %s899_s28 = sshll.u32 %s985_s12, 4  ;;  %s900_s28 = int_to_ptr.vmem [resolvable:$false] %s899_s28 }
  0x68   : > { %s901_s8 = scalar_lea.vmem %s900_s28, 512  ;;  %p902_p3 = scmp.lt.s32.totalorder %s1162_s9, %s900_s28 }
  0x69   : > { %p897_p4 = pnand %p896_p1, %p645_p2  ;;  %p903_p6 = scmp.lt.s32.totalorder %s901_s8, %s895_s23 }
  0x6b   : > { %p898_p5 = pneg %p897_p4  ;;  %p904_p11 = por %p903_p6, %p902_p3 }
  0x6d   : > { %p905_p13 = pnand %p904_p11, %p898_p5 }
  0x6f   : > { %908 = shalt.err (!%p905_p13)
}
  0x70   : > { %s986_s11 = smov 128   ;;  %s987_s27 = smov 8  }
  0x71   : > { %231 = dma.hbm_to_vmem [thread:$0]  (%p645_p2), %s1160_s26, %s1149_s10, %s1162_s9, %s1152_s25, %s986_s11, %s986_s11, %s987_s27  }
  0x72 PF: > { %p1296_p12 = scmp.ne.s32.totalorder %s1293_s7, 0 }
  0x73   : > { %s1192_s13 = sand.u32 (!%p1296_p12), 1, %s971_s19   ;;  %p1297_p0 = scmp.ne.s32.totalorder (!%p1296_p12), %s1290_s29, 0 }
  0x74   : > { %237 = sbr.rel (%p1296_p12) target bundleno = 630 (0x276), region = 40  ;;  %s650_s14 = sshll.u32 (!%p1296_p12), %s1192_s13, 4 }
  0x75   : > { %s240_s15 = scalar_lea.sflag (!%p1296_p12), [#allocation3], %s1192_s13  ;;  %s1198_s16 = scalar_lea.vmem (!%p1296_p12), [#allocation2], %s650_s14 }
  0x7b   : > { %954 = dma.done.wait (%p1297_p0), %s240_s15, 256  }
  0x7c   : > { %956 = vsyncadd (%p1297_p0), %s240_s15, 4294967040  ;;  %p1298_p2 = scmp.eq.s32.totalorder %s1044_s22, 0 }
  0x7e   : > { %958 = dma.done.wait (%p1298_p2), [#allocation6], 2048   ;;  %p1299_p7 = pmov %p1298_p2 }
  0x7f   : > { %v988_v0 = vmov 0.0   ;;  %vm989_vm0 = vmmov 0   ;;  %v809_v1 = vld [vmem:[#allocation5] sm:$0xff]   ;;  %v810_v2 = vld [vmem:[#allocation5 + $0x8] sm:$0xff]   ;;  %v811_v3 = vld [vmem:[#allocation5 + $0x10] sm:$0xff]   ;;  %s277_s26 = scalar_lea.vmem [#allocation8], %s650_s14 }
  0x80   : > { %960 = vsyncadd (%p1299_p7), [#allocation6], 4294965248  ;;  %701 = vmatprep.subr.bf16.mxu0 %v988_v0  ;;  %717 = vmatprep.mubr.msk.bf16.mxu0 %vm989_vm0, %v988_v0  ;;  %v817_v4 = vld [vmem:[#allocation7] sm:$0xff]   ;;  %v812_v5 = vld [vmem:[#allocation5 + $0x18] sm:$0xff]   ;;  %s526_s9 = scalar_lea.sflag [#allocation4], %s1192_s13  ;;  %p1300_p8 = scmp.ne.s32.totalorder %s1291_s30, 0 }
  0x81   : > { %721 = vmatprep.subr.bf16.mxu1 %v988_v0  ;;  %737 = vmatprep.mubr.msk.bf16.mxu1 %vm989_vm0, %v988_v0  ;;  %v818_v6 = vld [vmem:[#allocation7 + $0x8] sm:$0xff]   ;;  %v813_v7 = vld [vmem:[#allocation5 + $0x20] sm:$0xff]   ;;  %v819_v8 = vld [vmem:[#allocation7 + $0x10] sm:$0xff]   ;;  %s673_s17 = sshll.u32 (%p1300_p8), %s1044_s22, 1 }
  0x82   : > { %702 = vmatpush3.bf16.msra.mxu0 %v809_v1  ;;  %722 = vmatpush3.bf16.msra.mxu1 %v817_v4  ;;  %v814_v9 = vld [vmem:[#allocation5 + $0x28] sm:$0xff]   ;;  %v820_v10 = vld [vmem:[#allocation7 + $0x18] sm:$0xff]   ;;  %v815_v11 = vld [vmem:[#allocation5 + $0x30] sm:$0xff]   ;;  %s534_s23 = ssub.s32 (%p1300_p8), 5, %s673_s17 }
  0x83   : > { %703 = vmatprep.subr.bf16.mxu0 %v988_v0  ;;  %723 = vmatprep.subr.bf16.mxu1 %v988_v0  ;;  %v821_v12 = vld [vmem:[#allocation7 + $0x20] sm:$0xff]   ;;  %v816_v13 = vld [vmem:[#allocation5 + $0x38] sm:$0xff]   ;;  %v822_v16 = vld [vmem:[#allocation7 + $0x28] sm:$0xff]   ;;  %p535_p9 = scmp.lt.s32.totalorder (%p1300_p8), %s534_s23, 2 }
  0x84   : > { %v289_v14 = vld [vmem:[%s1198_s16] sm:$0xff]  ;;  %v290_v15 = vld [vmem:[%s1198_s16 + $0x8] sm:$0xff] }
  0x85   : > { %v291_v17 = vpack.c.bf16 %v290_v15, %v289_v14  ;;  %v823_v18 = vld [vmem:[#allocation7 + $0x30] sm:$0xff]   ;;  %v824_v19 = vld [vmem:[#allocation7 + $0x38] sm:$0xff]   ;;  %v654_v20 = vld [vmem:[%s1281_s2] ss:$0 sm:$0xff] }
  0x86   : > { %704 = vmatpush3.bf16.msra.mxu0 %v810_v2  ;;  %724 = vmatpush3.bf16.msra.mxu1 %v818_v6  ;;  %v663_v30 = vld [vmem:[%s1283_s4] ss:$0 sm:$0xff] }
  0x87   : > { %705 = vmatprep.subr.bf16.mxu0 %v988_v0  ;;  %725 = vmatprep.subr.bf16.mxu1 %v988_v0 }
  0x8a   : > { %706 = vmatpush3.bf16.msra.mxu0 %v811_v3  ;;  %726 = vmatpush3.bf16.msra.mxu1 %v819_v8 }
  0x8b   : > { %707 = vmatprep.subr.bf16.mxu0 %v988_v0  ;;  %727 = vmatprep.subr.bf16.mxu1 %v988_v0 }
  0x8e   : > { %708 = vmatpush3.bf16.msra.mxu0 %v812_v5  ;;  %728 = vmatpush3.bf16.msra.mxu1 %v820_v10 }
  0x8f   : > { %709 = vmatprep.subr.bf16.mxu0 %v988_v0  ;;  %729 = vmatprep.subr.bf16.mxu1 %v988_v0 }
  0x92   : > { %710 = vmatpush3.bf16.msra.mxu0 %v813_v7  ;;  %730 = vmatpush3.bf16.msra.mxu1 %v821_v12 }
  0x93   : > { %711 = vmatprep.subr.bf16.mxu0 %v988_v0  ;;  %731 = vmatprep.subr.bf16.mxu1 %v988_v0 }
  0x96   : > { %712 = vmatpush3.bf16.msra.mxu0 %v814_v9  ;;  %732 = vmatpush3.bf16.msra.mxu1 %v822_v16 }
  0x97   : > { %713 = vmatprep.subr.bf16.mxu0 %v988_v0  ;;  %733 = vmatprep.subr.bf16.mxu1 %v988_v0 }
  0x9a   : > { %714 = vmatpush3.bf16.msra.mxu0 %v815_v11  ;;  %734 = vmatpush3.bf16.msra.mxu1 %v823_v18 }
  0x9b   : > { %715 = vmatprep.subr.bf16.mxu0 %v988_v0  ;;  %735 = vmatprep.subr.bf16.mxu1 %v988_v0 }
  0x9e   : > { %716 = vmatpush3.bf16.msra.mxu0 %v816_v13  ;;  %736 = vmatpush3.bf16.msra.mxu1 %v824_v19 }
  0xa1   : > { %718 = vmatmul.mubr.bf16.vlgmr.msra.gmra.mrb[0].mxu0 %v291_v17 }
 0x174   : > { %v397_v21 = vpop.f32.mrb[0].mxu0 }
 0x175   : > { %v398_v22 = vadd.f32 %v654_v20, %v397_v21  ;;  %v719_v23 = vpop.f32.mrb[1].mxu0 }
 0x176   : > { %v400_v24 = vpop.f32.mrb[2].mxu0 }
 0x177   : > { %v401_v25 = vadd.f32 %v654_v20, %v400_v24  ;;  %v720_v26 = vpop.f32.mrb[3].mxu0  ;;  %v404_v27 = vmax.f32 %v398_v22, 0.0 }
 0x179   : > { %v405_v28 = vmax.f32 %v401_v25, 0.0 }
 0x17b   : > { %v406_v29 = vpack.c.bf16 %v405_v28, %v404_v27 }
 0x17d   : > { %738 = vmatmul.mubr.bf16.vlgmr.msra.gmra.mrb[0].mxu1 %v406_v29 }
 0x250   : > { %v512_v31 = vpop.f32.mrb[0].mxu1 }
 0x251   : > { %v513_v32 = vadd.f32 %v663_v30, %v512_v31  ;;  %v739_v33 = vpop.f32.mrb[1].mxu1 }
 0x252   : > { %v515_v34 = vpop.f32.mrb[2].mxu1 }
 0x253   : > { %v519_v35 = vadd.f32 %v513_v32, %v289_v14  ;;  %v516_v36 = vadd.f32 %v663_v30, %v515_v34  ;;  %v740_v37 = vpop.f32.mrb[3].mxu1  ;;  %532 = sbr.rel (!%p1300_p8) target bundleno = 630 (0x276), region = 56 }
 0x255   : > { %v521_v38 = vmax.f32 %v519_v35, 0.0  ;;  %v520_v39 = vadd.f32 %v516_v36, %v290_v15 }
 0x257   : > { %523 = vst [vmem:[%s277_s26] sm:$0xff] %v521_v38  ;;  %v522_v40 = vmax.f32 %v520_v39, 0.0 }
 0x259   : > { %524 = vst [vmem:[%s277_s26 + $0x8] sm:$0xff] %v522_v40 }
 0x25a   : > { %s1310_s23 = smov (!%p535_p9, %s534_s23), 2 }
 0x25b   : > { %s1222_s12 = sshll.u32 %s1310_s23, 7 }
 0x25c   : > { %s539_s28 = ssub.s32 256, %s1222_s12 }
 0x25d   : > { %540 = vsyncadd %s526_s9, %s539_s28  ;;  %p675_p10 = scmp.ne.s32.totalorder %s1222_s12, 0  ;;  %s682_s8 = sshll.u32 %s1044_s22, 8 }
 0x25e   : > { %s1232_s27 = scalar_lea.hbm %s1284_s5, %s682_s8  ;;  %s545_s14 = sshll.u32 %s277_s26, 4  ;;  %s1234_s14 = int_to_ptr.vmem [resolvable:$true] %s545_s14 }
 0x25f   : > { %s909_s15 = scalar_lea.vmem %s1234_s14, %s1222_s12  ;;  %s990_s16 = smov [#allocation8]  }
 0x260   : > { %p910_p1 = scmp.ne.s32.totalorder %s1234_s14, %s909_s15  ;;  %s913_s29 = sshll.u32 %s990_s16, 4  ;;  %s914_s29 = int_to_ptr.vmem [resolvable:$false] %s913_s29 }
 0x261   : > { %s915_s22 = scalar_lea.vmem %s914_s29, 512  ;;  %p916_p3 = scmp.lt.s32.totalorder %s1234_s14, %s914_s29 }
 0x262   : > { %p911_p4 = pnand %p910_p1, %p675_p10  ;;  %p917_p6 = scmp.lt.s32.totalorder %s915_s22, %s909_s15 }
 0x264   : > { %p912_p5 = pneg %p911_p4  ;;  %p918_p11 = por %p917_p6, %p916_p3 }
 0x266   : > { %p919_p13 = pnand %p918_p11, %p912_p5 }
 0x268   : > { %922 = shalt.err (!%p919_p13)
}
 0x269   : > { %s923_s7 = scalar_lea.hbm %s1232_s27, %s1222_s12  ;;  %s927_s26 = scalar_lea.hbm %s1284_s5, 640 }
 0x26a   : > { %p924_p12 = scmp.ne.s32.totalorder %s1232_s27, %s923_s7  ;;  %p928_p7 = scmp.lt.u32.totalorder %s1232_s27, %s1284_s5 }
 0x26b   : > { %p929_p8 = scmp.lt.u32.totalorder %s927_s26, %s923_s7  ;;  %p931_p1 = scmp.lt.u32.totalorder %s923_s7, %s1232_s27 }
 0x26c   : > { %p925_p0 = pnand %p924_p12, %p675_p10 }
 0x26d   : > { %p930_p9 = por %p929_p8, %p928_p7 }
 0x26e   : > { %p926_p2 = pneg %p925_p0 }
 0x26f   : > { %p932_p4 = por %p931_p1, %p930_p9 }
 0x271   : > { %p933_p5 = pnand %p932_p4, %p926_p2 }
 0x273   : > { %936 = shalt.err (!%p933_p5)
}
 0x274   : > { %s991_s28 = smov 128   ;;  %s992_s8 = smov 8  }
 0x275   : > { %551 = dma.vmem_to_hbm [thread:$0]  (%p675_p10), %s1234_s14, %s1222_s12, %s1232_s27, %s526_s9, %s991_s28, %s991_s28, %s992_s8  }
 0x276 PF: > { %p766_p3 = scmp.ge.s32.totalorder %s979_s21, 2  ;;  %s560_s30 = sand.u32 1, %s967_s18  }
 0x277   : > { %p1301_p6 = scmp.ne.s32.totalorder %s1292_s6, 0  ;;  %s561_s11 = scalar_lea.sflag [#allocation4], %s560_s30 }
 0x279   : > { %p759_p11 = pnand %p766_p3, %p1301_p6 }
 0x27b   : > { %962 = dma.done.wait (!%p759_p11), %s561_s11, 256  }
 0x27c   : > { %964 = vsyncadd (!%p759_p11), %s561_s11, 4294967040  ;;  %s1302_s15 = sld [smem:[#allocation12_spill]]  ;;  %p19_p13 = scmp.ge.s32.totalorder %s1048_s24, 5  }
 0x27d   : > { %s1303_s18 = smov %s971_s19  ;;  %s1304_s19 = smov %s975_s20 }
 0x27e   : > { %s1306_s21 = smov %s1048_s24  ;;  %21 = sbr.rel (!%p19_p13) target bundleno = 6 (0x6), region = 93 }
 0x282   : > { %s1305_s20 = smov %s1302_s15 }
 0x285   :  { %566 = vsyncpa [#allocation3], 1 }
 0x286   :  { %568 = vsyncpa [#allocation3 + $0x1], 1 }
 0x287   :  { %569 = vsyncpa [#allocation6], 1 }
 0x288   :  { %570 = vsyncpa [#allocation4], 1 }
 0x289   :  { %572 = vsyncpa [#allocation4 + $0x1], 1 }

</bundles_post_ra>
